<compile_context>
chip_gen: v7x
topology: tpu7x:2x2x1
jax: 0.10.0
libtpu: 0.0.40
codegen_flags: <defaults>
</compile_context>

<pallas_src>
import functools

import jax
import jax.numpy as jnp
from jax.experimental import pallas as pl
from jax.experimental.pallas import tpu as pltpu


def _attention_kernel(g_ref, x_ref, wg_ref, wx_ref, wpsi_ref, b_ref, bpsi_ref,
                      out_ref, *, use_mxu):
    # g_ref: (F_g, TILE_P), x_ref: (F_l, TILE_P)  -- channel-major, pixels on lanes
    # wg_ref: (F_int, F_g), wx_ref: (F_int, F_l)  -- compute dtype (f32 or bf16)
    # wpsi_ref: (1, F_int) [MXU path] or (F_int, 1) [VPU path], f32
    # b_ref: (F_int, 1) f32 (folded b_g + b_x); bpsi_ref: (1, 1) f32
    f_g = g_ref.shape[0]
    f_l = x_ref.shape[0]

    g = g_ref[...]          # native dtype
    x = x_ref[...]

    if use_mxu:
        # 1x1 convs as channel-major matmuls on the MXU; native-dtype operands
        # (bf16 stays bf16), f32 accumulation via preferred_element_type.
        mm_dtype = wg_ref.dtype
        g_mm = g if g.dtype == mm_dtype else g.astype(mm_dtype)
        x_mm = x if x.dtype == mm_dtype else x.astype(mm_dtype)
        pre = (jnp.dot(wg_ref[...], g_mm, preferred_element_type=jnp.float32)
               + jnp.dot(wx_ref[...], x_mm, preferred_element_type=jnp.float32))
    else:
        # Tiny channel counts: unrolled outer-product accumulation on the VPU,
        #   pre[o, p] = sum_c Wg[o, c] * g[c, p] + sum_c Wx[o, c] * x[c, p]
        pre = None
        for c in range(f_g):
            t = wg_ref[:, c:c + 1] * g[c:c + 1, :]        # (F_int,1)*(1,TILE_P)
            pre = t if pre is None else pre + t
        for c in range(f_l):
            pre = pre + wx_ref[:, c:c + 1] * x[c:c + 1, :]

    pre = pre + b_ref[...]                                # folded b_g + b_x
    p = jnp.maximum(pre, 0.0)                             # ReLU, f32

    if use_mxu:
        # psi logits as a (1, F_int) x (F_int, TILE_P) matmul: rides the MXU
        # slot, avoids the (F_int, TILE_P) elementwise temp + XLU reduction.
        psi_logit = (jnp.dot(wpsi_ref[...], p, preferred_element_type=jnp.float32)
                     + bpsi_ref[...])
    else:
        psi_logit = jnp.sum(wpsi_ref[...] * p, axis=0, keepdims=True) + bpsi_ref[...]

    # Gate in the output dtype (bf16 gating when the model is bf16).
    psi = jax.nn.sigmoid(psi_logit).astype(out_ref.dtype)
    out_ref[...] = (x * psi).astype(out_ref.dtype)


def _tpu_vmem_capacity_bytes():
    """Physical per-core VMEM; conservative (v7x-sized) fallback on failure."""
    try:
        return int(pltpu.get_tpu_info().vmem_capacity_bytes)
    except Exception:
        return 64 << 20


def _pick_tile_p(hw, f_g, f_l, f_int, g_item, x_item, out_item, use_mxu,
                 vmem_budget_bytes, max_tile=64 * 1024):
    """Largest pixel tile (multiple of 128) whose full working set — double-
    buffered g/x/out blocks plus f32 intermediates — fits the VMEM budget."""
    f32 = 4
    per_pixel = (
        2 * (f_g * g_item + f_l * x_item)   # double-buffered input blocks
        + 2 * f_l * out_item                # double-buffered output block
        + 2 * f_int * f32                   # pre-activation + ReLU (f32)
        + f32                               # psi row (f32)
        + f_l * f32                         # pre-cast gated product
    )
    if use_mxu:
        per_pixel += (f_g + f_l) * f32      # possible activation casts for MXU
    t = (vmem_budget_bytes // max(per_pixel, 1)) // 128 * 128
    t = int(max(128, min(max_tile, t)))
    return hw if hw <= t else t


def _cap_for_two_grid_steps(tile_p, hw):
    """Cap tile_p so the pixel axis has >= 2 grid steps (keeps both v7x
    TensorCores busy when N == 1).  No-op when hw is too small to split."""
    if hw <= 128:
        return tile_p
    half_up = (((hw + 1) // 2) + 127) // 128 * 128   # ceil(hw/2), 128-aligned up
    if half_up >= hw:
        half_up = max(128, ((hw // 2) // 128) * 128)
    if 128 <= half_up < hw:
        return min(tile_p, half_up)
    return tile_p


def attention_block(g, x, params, *, tile_p=None):
    """g: (N, F_g, H, W), x: (N, F_l, H, W) in NCHW. Returns (N, F_l, H, W)."""
    wg, bg, wx, bx, wpsi, bpsi = params
    N, F_g, H, W = g.shape
    _, F_l, _, _ = x.shape
    F_int = wg.shape[0]
    HW = H * W

    g_item = jnp.dtype(g.dtype).itemsize
    x_item = jnp.dtype(x.dtype).itemsize
    out_item = x_item

    # Generation-aware VMEM budgeting / scoped limit and MXU crossover.
    vmem_cap = _tpu_vmem_capacity_bytes()
    small_vmem = vmem_cap <= (64 << 20)                 # v7x-class TensorCore
    vmem_budget = (28 << 20) if small_vmem else (40 << 20)
    vmem_limit = (48 << 20) if small_vmem else (64 << 20)
    mxu_threshold = 8 if small_vmem else 16
    use_mxu = max(F_g, F_l, F_int) >= mxu_threshold

    # Free reshapes only: NCHW is already channel-major per sample.
    g3 = g.reshape(N, F_g, HW)
    x3 = x.reshape(N, F_l, HW)

    if tile_p is None:
        tile_p = _pick_tile_p(HW, F_g, F_l, F_int, g_item, x_item, out_item,
                              use_mxu, vmem_budget)
        if N == 1:
            tile_p = _cap_for_two_grid_steps(tile_p, HW)
    else:
        tile_p = max(128, (int(tile_p) // 128) * 128)   # clamp: never 0
        tile_p = HW if HW <= tile_p else tile_p
    n_ptiles = pl.cdiv(HW, tile_p)

    # Compute dtype for the 1x1-conv contraction: bf16 MXU matmuls when the
    # activations are bf16 (f32 accumulation); f32 otherwise / on the VPU path.
    in_dtype = jnp.result_type(g.dtype, x.dtype)
    mm_dtype = jnp.bfloat16 if (use_mxu and in_dtype == jnp.bfloat16) else jnp.float32
    wg_c = wg.astype(mm_dtype)
    wx_c = wx.astype(mm_dtype)

    # Fold the two pre-activation biases; small params as 2-D f32 blocks.
    b_comb = (bg.astype(jnp.float32) + bx.astype(jnp.float32)).reshape(F_int, 1)
    bpsi2 = jnp.asarray(bpsi, jnp.float32).reshape(1, 1)
    if use_mxu:
        wpsi_arr = wpsi.astype(jnp.float32).reshape(1, F_int)   # row for MXU dot
        wpsi_spec = pl.BlockSpec((1, F_int), lambda n, p: (0, 0))
    else:
        wpsi_arr = wpsi.astype(jnp.float32).reshape(F_int, 1)   # column for VPU
        wpsi_spec = pl.BlockSpec((F_int, 1), lambda n, p: (0, 0))

    kernel = functools.partial(_attention_kernel, use_mxu=use_mxu)

    # Accurate memory-bound cost hint for XLA's scheduler.
    param_bytes = (wg_c.size * wg_c.dtype.itemsize + wx_c.size * wx_c.dtype.itemsize
                   + 4 * (F_int + F_int + 1))
    cost = pl.CostEstimate(
        flops=int(N * HW * (2 * F_int * (F_g + F_l) + 4 * F_int + F_l + 2)),
        transcendentals=int(N * HW),
        bytes_accessed=int(N * HW * (F_g * g_item + F_l * x_item + F_l * out_item)
                           + param_bytes),
    )

    out3 = pl.pallas_call(
        kernel,
        out_shape=jax.ShapeDtypeStruct((N, F_l, HW), x.dtype),
        grid_spec=pltpu.PrefetchScalarGridSpec(
            num_scalar_prefetch=0,
            grid=(N, n_ptiles),
            in_specs=[
                pl.BlockSpec((None, F_g, tile_p), lambda n, p: (n, 0, p)),  # g tile
                pl.BlockSpec((None, F_l, tile_p), lambda n, p: (n, 0, p)),  # x tile
                pl.BlockSpec((F_int, F_g), lambda n, p: (0, 0)),            # W_g
                pl.BlockSpec((F_int, F_l), lambda n, p: (0, 0)),            # W_x
                wpsi_spec,                                                  # W_psi
                pl.BlockSpec((F_int, 1), lambda n, p: (0, 0)),              # b_g + b_x
                pl.BlockSpec((1, 1), lambda n, p: (0, 0)),                  # b_psi
            ],
            out_specs=pl.BlockSpec((None, F_l, tile_p), lambda n, p: (n, 0, p)),
        ),
        compiler_params=pltpu.CompilerParams(
            # Both grid axes are independent -> shardable across v7x's 2 TCs;
            # harmless on single-TC v5e/v6e.
            dimension_semantics=("parallel", "parallel"),
            # Generation-aware scoped-VMEM limit: <=48 MiB on v7x (64 MiB
            # physical, leave headroom for compiler scratch), 64 MiB on
            # v5e/v6e (128 MiB physical).
            vmem_limit_bytes=vmem_limit,
        ),
        cost_estimate=cost,
    )(g3, x3, wg_c, wx_c, wpsi_arr, b_comb, bpsi2)

    return out3.reshape(N, F_l, H, W)


def init_params(key, F_g, F_l, F_int, dtype=jnp.float32):
    """Synthetic parameters matching Conv2d(k=1) shapes: W is (out_ch, in_ch)."""
    ks = jax.random.split(key, 6)
    wg = jax.random.normal(ks[0], (F_int, F_g), dtype) * 0.1
    bg = jax.random.normal(ks[1], (F_int,), dtype) * 0.1
    wx = jax.random.normal(ks[2], (F_int, F_l), dtype) * 0.1
    bx = jax.random.normal(ks[3], (F_int,), dtype) * 0.1
    wpsi = jax.random.normal(ks[4], (F_int,), dtype) * 0.1
    bpsi = jax.random.normal(ks[5], (), dtype) * 0.1
    return wg, bg, wx, bx, wpsi, bpsi


def reference(g, x, params):
    """Plain-JAX reference in NCHW with identical semantics."""
    wg, bg, wx, bx, wpsi, bpsi = params
    g1 = jnp.einsum('oc,nchw->nohw', wg, g) + bg[None, :, None, None]
    x1 = jnp.einsum('oc,nchw->nohw', wx, x) + bx[None, :, None, None]
    p = jax.nn.relu(g1 + x1)
    psi = jax.nn.sigmoid(jnp.einsum('o,nohw->nhw', wpsi, p)[:, None, :, :] + bpsi)
    return x * psi


if __name__ == "__main__":
    # Small shapes: batch=2, F_g=F_l=4, F_int=8, spatial=16x16.
    N, F_g, F_l, F_int, Hs, Ws = 2, 4, 4, 8, 16, 16

    key = jax.random.PRNGKey(0)
    kg, kx, kp = jax.random.split(key, 3)
    g = jax.random.normal(kg, (N, F_g, Hs, Ws), jnp.float32)
    x = jax.random.normal(kx, (N, F_l, Hs, Ws), jnp.float32)
    params = init_params(kp, F_g, F_l, F_int)

    out = attention_block(g, x, params)
    out = jax.block_until_ready(out)

    ref = jax.block_until_ready(reference(g, x, params))
    assert out.shape == (N, F_l, Hs, Ws)
    assert jnp.allclose(out, ref, atol=1e-5, rtol=1e-5), "mismatch vs reference"

    print("KERNEL_OK")
</pallas_src>

<mosaic_0001>
module attributes {stable_mosaic.version = 11 : i64} {
  func.func @_attention_kernel(%arg0: i32, %arg1: i32, %arg2: memref<1x4x256xf32, #tpu.memory_space<vmem>>, %arg3: memref<1x4x256xf32, #tpu.memory_space<vmem>>, %arg4: memref<8x4xf32, #tpu.memory_space<vmem>>, %arg5: memref<8x4xf32, #tpu.memory_space<vmem>>, %arg6: memref<1x8xf32, #tpu.memory_space<vmem>>, %arg7: memref<8x1xf32, #tpu.memory_space<vmem>>, %arg8: memref<1x1xf32, #tpu.memory_space<vmem>>, %arg9: memref<1x4x256xf32, #tpu.memory_space<vmem>>) attributes {dimension_semantics = [#tpu.dimension_semantics<parallel>, #tpu.dimension_semantics<parallel>], iteration_bounds = array<i64: 2, 1>, scalar_prefetch = 0 : i64, scratch_operands = 0 : i64, tpu.core_type = #tpu.core_type<tc>, window_params = [{transform_indices = @transform_0, window_bounds = array<i64: 1, 4, 256>}, {transform_indices = @transform_1, window_bounds = array<i64: 1, 4, 256>}, {pipeline_mode = #tpu.pipeline_mode<synchronous>, transform_indices = @transform_2, window_bounds = array<i64: 8, 4>}, {pipeline_mode = #tpu.pipeline_mode<synchronous>, transform_indices = @transform_3, window_bounds = array<i64: 8, 4>}, {pipeline_mode = #tpu.pipeline_mode<synchronous>, transform_indices = @transform_4, window_bounds = array<i64: 1, 8>}, {pipeline_mode = #tpu.pipeline_mode<synchronous>, transform_indices = @transform_5, window_bounds = array<i64: 8, 1>}, {pipeline_mode = #tpu.pipeline_mode<synchronous>, transform_indices = @transform_6, window_bounds = array<i64: 1, 1>}, {transform_indices = @transform_7, window_bounds = array<i64: 1, 4, 256>}]} {
    %c0 = arith.constant 0 : index
    %c0_0 = arith.constant 0 : index
    %c0_1 = arith.constant 0 : index
    %0 = vector.load %arg2[%c0, %c0_0, %c0_1] : memref<1x4x256xf32, #tpu.memory_space<vmem>>, vector<1x4x256xf32>
    %1 = vector.shape_cast %0 : vector<1x4x256xf32> to vector<4x256xf32>
    %c0_2 = arith.constant 0 : index
    %c0_3 = arith.constant 0 : index
    %c0_4 = arith.constant 0 : index
    %2 = vector.load %arg3[%c0_2, %c0_3, %c0_4] : memref<1x4x256xf32, #tpu.memory_space<vmem>>, vector<1x4x256xf32>
    %3 = vector.shape_cast %2 : vector<1x4x256xf32> to vector<4x256xf32>
    %c0_5 = arith.constant 0 : index
    %c0_6 = arith.constant 0 : index
    %4 = vector.load %arg4[%c0_5, %c0_6] : memref<8x4xf32, #tpu.memory_space<vmem>>, vector<8x4xf32>
    %cst = arith.constant dense<0.000000e+00> : vector<8x256xf32>
    %5 = tpu.matmul %4, %1, %cst {dimension_numbers = #tpu.dot_dimension_numbers<[1], [0], [0], [1], [0, 0, 1, 1], [], []>} : vector<8x4xf32>, vector<4x256xf32>, vector<8x256xf32> -> vector<8x256xf32>
    %c0_7 = arith.constant 0 : index
    %c0_8 = arith.constant 0 : index
    %6 = vector.load %arg5[%c0_7, %c0_8] : memref<8x4xf32, #tpu.memory_space<vmem>>, vector<8x4xf32>
    %cst_9 = arith.constant dense<0.000000e+00> : vector<8x256xf32>
    %7 = tpu.matmul %6, %3, %cst_9 {dimension_numbers = #tpu.dot_dimension_numbers<[1], [0], [0], [1], [0, 0, 1, 1], [], []>} : vector<8x4xf32>, vector<4x256xf32>, vector<8x256xf32> -> vector<8x256xf32>
    %8 = arith.addf %5, %7 : vector<8x256xf32>
    %c0_10 = arith.constant 0 : index
    %c0_11 = arith.constant 0 : index
    %9 = vector.load %arg7[%c0_10, %c0_11] : memref<8x1xf32, #tpu.memory_space<vmem>>, vector<8x1xf32>
    %10 = vector.broadcast %9 : vector<8x1xf32> to vector<8x256xf32>
    %11 = arith.addf %8, %10 : vector<8x256xf32>
    %cst_12 = arith.constant 0.000000e+00 : f32
    %12 = vector.broadcast %cst_12 : f32 to vector<8x256xf32>
    %13 = arith.maximumf %11, %12 : vector<8x256xf32>
    %c0_13 = arith.constant 0 : index
    %c0_14 = arith.constant 0 : index
    %14 = vector.load %arg6[%c0_13, %c0_14] : memref<1x8xf32, #tpu.memory_space<vmem>>, vector<1x8xf32>
    %cst_15 = arith.constant dense<0.000000e+00> : vector<1x256xf32>
    %15 = tpu.matmul %14, %13, %cst_15 {dimension_numbers = #tpu.dot_dimension_numbers<[1], [0], [0], [1], [0, 0, 1, 1], [], []>} : vector<1x8xf32>, vector<8x256xf32>, vector<1x256xf32> -> vector<1x256xf32>
    %c0_16 = arith.constant 0 : index
    %c0_17 = arith.constant 0 : index
    %16 = vector.load %arg8[%c0_16, %c0_17] : memref<1x1xf32, #tpu.memory_space<vmem>>, vector<1x1xf32>
    %17 = vector.broadcast %16 : vector<1x1xf32> to vector<1x256xf32>
    %18 = arith.addf %15, %17 : vector<1x256xf32>
    %19 = arith.negf %18 : vector<1x256xf32>
    %20 = math.exp %19 : vector<1x256xf32>
    %cst_18 = arith.constant 1.000000e+00 : f32
    %21 = vector.broadcast %cst_18 : f32 to vector<1x256xf32>
    %22 = arith.addf %21, %20 : vector<1x256xf32>
    %23 = arith.divf %21, %22 : vector<1x256xf32>
    %24 = vector.broadcast %23 : vector<1x256xf32> to vector<4x256xf32>
    %25 = arith.mulf %3, %24 : vector<4x256xf32>
    %c0_19 = arith.constant 0 : index
    %c0_20 = arith.constant 0 : index
    %c0_21 = arith.constant 0 : index
    %26 = vector.load %arg9[%c0_19, %c0_20, %c0_21] : memref<1x4x256xf32, #tpu.memory_space<vmem>>, vector<1x4x256xf32>
    %27 = vector.shape_cast %26 : vector<1x4x256xf32> to vector<4x256xf32>
    %28 = vector.shape_cast %25 : vector<4x256xf32> to vector<1x4x256xf32>
    tpu.vector_store %arg9[%c0_19, %c0_20, %c0_21], %28 {strides = array<i32>} : memref<1x4x256xf32, #tpu.memory_space<vmem>>, vector<1x4x256xf32>,
    return
  }
  func.func @transform_0(%arg0: i32, %arg1: i32) -> (i32, i32, i32) {
    %c0_i32 = arith.constant 0 : i32
    %c0_i32_0 = arith.constant 0 : i32
    return %arg0, %c0_i32, %arg1 : i32, i32, i32
  }
  func.func @transform_1(%arg0: i32, %arg1: i32) -> (i32, i32, i32) {
    %c0_i32 = arith.constant 0 : i32
    %c0_i32_0 = arith.constant 0 : i32
    return %arg0, %c0_i32, %arg1 : i32, i32, i32
  }
  func.func @transform_2(%arg0: i32, %arg1: i32) -> (i32, i32) {
    %c0_i32 = arith.constant 0 : i32
    %c0_i32_0 = arith.constant 0 : i32
    %c0_i32_1 = arith.constant 0 : i32
    return %c0_i32, %c0_i32_0 : i32, i32
  }
  func.func @transform_3(%arg0: i32, %arg1: i32) -> (i32, i32) {
    %c0_i32 = arith.constant 0 : i32
    %c0_i32_0 = arith.constant 0 : i32
    %c0_i32_1 = arith.constant 0 : i32
    return %c0_i32, %c0_i32_0 : i32, i32
  }
  func.func @transform_4(%arg0: i32, %arg1: i32) -> (i32, i32) {
    %c0_i32 = arith.constant 0 : i32
    %c0_i32_0 = arith.constant 0 : i32
    %c0_i32_1 = arith.constant 0 : i32
    return %c0_i32, %c0_i32_0 : i32, i32
  }
  func.func @transform_5(%arg0: i32, %arg1: i32) -> (i32, i32) {
    %c0_i32 = arith.constant 0 : i32
    %c0_i32_0 = arith.constant 0 : i32
    %c0_i32_1 = arith.constant 0 : i32
    return %c0_i32, %c0_i32_0 : i32, i32
  }
  func.func @transform_6(%arg0: i32, %arg1: i32) -> (i32, i32) {
    %c0_i32 = arith.constant 0 : i32
    %c0_i32_0 = arith.constant 0 : i32
    %c0_i32_1 = arith.constant 0 : i32
    return %c0_i32, %c0_i32_0 : i32, i32
  }
  func.func @transform_7(%arg0: i32, %arg1: i32) -> (i32, i32, i32) {
    %c0_i32 = arith.constant 0 : i32
    %c0_i32_0 = arith.constant 0 : i32
    return %arg0, %c0_i32, %arg1 : i32, i32, i32
  }
}

</mosaic_0001>

<bundles_post_ra>
// kernel: tpu_custom_call.1
= control target key start
LH: loop header
LB: loop body
LE: loop exit
PB: predicated region body
PF: predicated region fallthrough
CT: control target
= control target key end

     0   :  { %s1095_s0 = inlined_call_operand.vmem [shape: f32[2,4,256], index: 0, kind: input, shape index: {}]   ;;  %s1096_s1 = inlined_call_operand.vmem [shape: f32[2,4,256], index: 1, kind: input, shape index: {}]   ;;  %s1097_s2 = inlined_call_operand.vmem [shape: f32[8,4], index: 2, kind: input, shape index: {}]   ;;  %s1098_s3 = inlined_call_operand.vmem [shape: f32[8,4], index: 3, kind: input, shape index: {}]   ;;  %s1099_s4 = inlined_call_operand.vmem [shape: f32[1,8], index: 4, kind: input, shape index: {}]   ;;  %s1100_s5 = inlined_call_operand.vmem [shape: f32[8,1], index: 5, kind: input, shape index: {}]   ;;  %s1101_s6 = inlined_call_operand.<no memory space> [shape: f32[1,1], index: 6, kind: input, shape index: {}]   ;;  %s1102_s7 = inlined_call_operand.hbm [shape: f32[2,4,256], index: 7, kind: output, shape index: {}]  }
   0x1   :  { %v12_v0 = vstv %s1101_s6 }
   0x2   :  { %13 = vst [vmem:[#allocation2] sm:$0x1] %v12_v0 }
   0x3   :  { %14 = vsyncpa [#allocation4], 0 }
   0x4   :  { %16 = vsyncpa [#allocation4 + $0x1], 0  ;;  %s968_s26 = smov 0   ;;  %s970_s27 = smov 0  }
   0x5   :  { %s972_s28 = smov 0   ;;  %s974_s29 = smov 0  }
   0x6   :  { %s976_s30 = smov 0   ;;  %s978_s8 = smov 0  }
   0x7 LB: > { %s745_s6 = sadd.s32 4294967295, %s920_s8   ;;  %s746_s9 = sadd.s32 4294967294, %s920_s8   ;;  %s920_s8 = sphi %s978_s8, %s22_s8   ;;  %s916_s30 = sphi %s976_s30, %s1109_s30   ;;  %s912_s29 = sphi %s974_s29, %s1108_s29   ;;  %s908_s28 = sphi %s972_s28, %s1107_s28   ;;  %s904_s27 = sphi %s970_s27, %s1106_s27   ;;  %s900_s26 = sphi %s968_s26, %s1105_s26  }
   0x8   : > { %s34_s10 = sadd.s32 1, %s916_s30  ;;  %s204_s11 = sadd.s32 1, %s908_s28 }
   0x9   : > { %p36_p0 = scmp.ge.s32.totalorder %s34_s10, 2  ;;  %p214_p1 = scmp.ne.s32.totalorder %s908_s28, %s904_s27 }
   0xa   : > { %p215_p2 = scmp.eq.s32.totalorder %s745_s6, 1  ;;  %p220_p3 = scmp.ne.s32.totalorder %s904_s27, %s900_s26 }
   0xb   : > { %s1111_s10 = smov (%p36_p0, %s34_s10), 0  ;;  %p221_p5 = scmp.eq.s32.totalorder %s746_s9, 1 }
   0xc   : > { %p1008_p4 = por %p215_p2, %p214_p1  ;;  %s199_s13 = ssub.s32 %s916_s30, %s1111_s10 }
   0xd   : > { %p749_p6 = scmp.ge.s32.totalorder %s920_s8, 1  ;;  %p202_p7 = scmp.eq.s32.totalorder %s199_s13, 0 }
   0xe   : > { %p1015_p8 = por %p221_p5, %p220_p3  ;;  %p280_p9 = scmp.lt.s32.totalorder %s920_s8, 3 }
   0xf   : > { %s1021_s15 = scalar_select %p202_p7, %s908_s28, %s204_s11  }
  0x10   : > { %p281_p10 = pnand %p749_p6, %p280_p9 }
  0x11   : > { %p326_p11 = scmp.lt.s32.totalorder (!%p281_p10), %s912_s29, 1  ;;  %v922_v1 = vmov (!%p281_p10), 0.0   ;;  %v512_v2 = vld [vmem:[%s1100_s5] sm:$0xff] (!%p281_p10)  ;;  %v923_v3 = vmov (!%p281_p10), 0   ;;  %vm356_vm0 = vcmask (!%p281_p10), 1043456   ;;  %vm352_vm1 = vcmask (!%p281_p10), 31744  }
  0x12   : > { %284 = sbr.rel (%p281_p10) target bundleno = 523 (0x20b), region = 48  ;;  %425 = vmatprep.mubr.f32.mxu0 (!%p281_p10), %v922_v1  ;;  %601 = vmatprep.mubr.f32.mxu1 (!%p281_p10), %v922_v1  ;;  %v523_v4 = vld [vmem:[#allocation2] sm:$0x1] (!%p281_p10)  ;;  %vm533_vm2 = vcmask (!%p281_p10), 64512   ;;  %v529_v19 = vlaneseq (!%p281_p10)  ;;  %s771_s20 = sshll.u32 (!%p281_p10), %s912_s29, 7 }
  0x13   : > { %831 = vset.pattern.permute.xlu0 (!%p281_p10), %v923_v3  ;;  %v349_v9 = vld [vmem:[%s1098_s3] sm:$0xff] (!%p281_p10) }
  0x14   : > { %515 = vperm.xlu0 (!%p281_p10), %831, %v512_v2   ;;  %v348_v10 = vld [vmem:[%s1097_s2] sm:$0xff] (!%p281_p10)  ;;  %v530_v20 = vshrl.u32 (!%p281_p10), %v529_v19, 7 }
  0x15   : > { %v522_v18 = vld [vmem:[%s1099_s4] sm:$0x1] (!%p281_p10) }
  0x16   : > { %v531_v21 = vsub.s32 (!%p281_p10), 0, %v530_v20 }
  0x18   : > { %526 = vperm.xlu0 (!%p281_p10), %831, %v523_v4  }
  0x19   : > { %s327_s18 = scalar_select %p326_p11, %s912_s29, 1 }
  0x1a   : > { %s924_s29 = smov [#allocation3]  }
  0x1b   : > { %s769_s19 = sshll.u32 %s327_s18, 3  ;;  %s322_s18 = sand.u32 1, %s904_s27  }
  0x1c   : > { %s333_s22 = scalar_lea.vmem %s1095_s0, %s769_s19  ;;  %s343_s25 = scalar_lea.vmem %s1096_s1, %s769_s19 }
  0x1d   : > { %v346_v5 = vld [vmem:[%s333_s22] sm:$0xff]  ;;  %s750_s19 = sshll.u32 %s322_s18, 3  ;;  %s635_s6 = scalar_lea.sflag [#allocation4], %s322_s18 }
  0x1e   : > { %v347_v6 = vld [vmem:[%s343_s25] sm:$0xff]  ;;  %v433_v8 = vcombine.high %v346_v5, %v346_v5  ;;  %s324_s21 = scalar_lea.vmem [#allocation3], %s750_s19  ;;  %s1048_s25 = scalar_lea.hbm %s1102_s7, %s771_s20 }
  0x1f   : > { %v351_v7 = vcombine.high %v347_v6, %v347_v6  ;;  %s651_s22 = sshll.u32 %s324_s21, 4  ;;  %s846_s11 = sshll.u32 %s924_s29, 4  ;;  %s1050_s22 = int_to_ptr.vmem [resolvable:$true] %s651_s22  ;;  %s847_s11 = int_to_ptr.vmem [resolvable:$false] %s846_s11 }
  0x20   : > { %s842_s9 = scalar_lea.vmem %s1050_s22, 128  ;;  %s848_s13 = scalar_lea.vmem %s847_s11, 256 }
  0x21   : > { %755 = vmatprep.subr.msk.mxu0 %vm356_vm0, %v351_v7  ;;  %p843_p12 = scmp.ne.s32.totalorder %s1050_s22, %s842_s9  ;;  %p849_p1 = scmp.lt.s32.totalorder %s1050_s22, %s847_s11 }
  0x22   : > { %756 = vmatpush1.msk.msra.mxu0 %vm356_vm0, %v347_v6  ;;  %p850_p2 = scmp.lt.s32.totalorder %s848_s13, %s842_s9 }
  0x23   : > { %757 = vmatmul.mubr.msk.f32.vlgmr.msra.gmra.mrb[0].mxu0 %vm352_vm1, %v349_v9  ;;  %758 = vmatprep.subr.msk.mxu0 %vm356_vm0, %v433_v8  ;;  %p844_p13 = pnand %p843_p12, %p1008_p4 }
  0x24   : > { %759 = vmatpush1.msk.msra.mxu0 %vm356_vm0, %v346_v5  ;;  %505 = vmatprep.mubr.f32.mxu0 %v922_v1  ;;  %p851_p3 = por %p850_p2, %p849_p1 }
  0x25   : > { %p845_p0 = pneg %p844_p13 }
  0x27   : > { %p852_p5 = pnand %p851_p3, %p845_p0 }
  0x2b   : > { %760 = vmatmul.mubr.msk.f32.vlgmr.msra.gmra.mrb[0].mxu0 %vm352_vm1, %v348_v10 }
  0x93   : > { %v516_v11 = vpop.permute.xlu0 %515 }
  0x97   : > { %v527_v22 = vpop.permute.xlu0 %526 }
  0x98   : > { %v532_v23 = vrot.slane %v527_v22, %v531_v21 }
  0xfe   : > { %v507_v12 = vpop.f32.mrb[0].mxu0 }
  0xff   : > { %v518_v13 = vadd.f32 %v516_v11, %v507_v12  ;;  %v509_v14 = vpop.f32.mrb[1].mxu0 }
 0x100   : > { %v519_v15 = vadd.f32 %v516_v11, %v509_v14 }
 0x101   : > { %v520_v17 = vmax.f32 %v518_v13, 0.0 }
 0x102   : > { %v521_v16 = vmax.f32 %v519_v15, 0.0 }
 0x104   : > { %537 = vmatprep.subr.mxu1 %v521_v16 }
 0x105   : > { %538 = vmatpush1.msra.mxu1 %v520_v17 }
 0x106   : > { %761 = vmatmul.mubr.msk.f32.vlgmr.msra.gmra.mrb[0].mxu1 %vm533_vm2, %v522_v18 }
 0x1d9   : > { %v603_v24 = vpop.f32.mrb[0].mxu1 }
 0x1da   : > { %v604_v25 = vadd.f32 %v603_v24, %v532_v23  ;;  %v605_v26 = vpop.f32.mrb[1].mxu1 }
 0x1db   : > { %v606_v27 = vadd.f32 %v605_v26, %v532_v23 }
 0x1dc   : > { %v762_v28 = vmul.f32 -1.442695, %v604_v25 }
 0x1dd   : > { %v763_v29 = vmul.f32 -1.442695, %v606_v27 }
 0x1de   : > { %834 = vpow2.f32 %v762_v28 }
 0x1df   : > { %836 = vpow2.f32 %v763_v29 }
 0x1e8   : > { %v835_v30 = vpop.eup %834 }
 0x1e9   : > { %v837_v31 = vpop.eup %836  ;;  %v614_v32 = vadd.f32 1.0, %v835_v30 }
 0x1ea   : > { %v615_v33 = vadd.f32 1.0, %v837_v31 }
 0x1eb   : > { %838 = vrcp.f32 %v614_v32 }
 0x1ec   : > { %840 = vrcp.f32 %v615_v33 }
 0x1f5   : > { %v839_v34 = vpop.eup %838 }
 0x1f6   : > { %v841_v35 = vpop.eup %840  ;;  %v623_v36 = vrot.slane %v839_v34, %v531_v21 }
 0x1f7   : > { %v627_v37 = vrot.slane %v841_v35, %v531_v21 }
 0x1f9   : > { %v630_v38 = vcombine.low %v623_v36, %v627_v37 }
 0x1fb   : > { %v632_v39 = vmul.f32 %v630_v38, %v347_v6 }
 0x1fd   : > { %633 = vst [vmem:[%s324_s21] sm:$0xff] %v632_v39 }
 0x1fe   : > { %855 = shalt.err (!%p852_p5)
}
 0x1ff   : > { %s856_s16 = scalar_lea.hbm %s1048_s25, 128  ;;  %s860_s19 = scalar_lea.hbm %s1102_s7, 256 }
 0x200   : > { %p857_p6 = scmp.ne.s32.totalorder %s1048_s25, %s856_s16  ;;  %p861_p10 = scmp.lt.u32.totalorder %s1048_s25, %s1102_s7 }
 0x201   : > { %p862_p11 = scmp.lt.u32.totalorder %s860_s19, %s856_s16  ;;  %p864_p13 = scmp.lt.u32.totalorder %s856_s16, %s1048_s25 }
 0x202   : > { %p858_p7 = pnand %p857_p6, %p1008_p4 }
 0x203   : > { %p863_p12 = por %p862_p11, %p861_p10 }
 0x204   : > { %p859_p9 = pneg %p858_p7 }
 0x205   : > { %p865_p0 = por %p864_p13, %p863_p12 }
 0x207   : > { %p866_p1 = pnand %p865_p0, %p859_p9 }
 0x209   : > { %869 = shalt.err (!%p866_p1)
}
 0x20a   : > { %774 = dma.vmem_to_hbm [thread:$0]  (%p1008_p4), %s1050_s22, 128, %s1048_s25, %s635_s6  }
 0x20b PF: > { %p780_p2 = scmp.ge.s32.totalorder %s920_s8, 2  ;;  %s663_s23 = sand.u32 1, %s900_s26  }
 0x20c   : > { %s664_s24 = scalar_lea.sflag [#allocation4], %s663_s23 }
 0x20d   : > { %p777_p3 = pnand %p780_p2, %p1015_p8 }
 0x20f   : > { %895 = dma.done.wait (!%p777_p3), %s664_s24, 128  }
 0x210   : > { %897 = vsyncadd (!%p777_p3), %s664_s24, 4294967168  ;;  %s22_s8 = sadd.s32 1, %s920_s8   ;;  %s1105_s26 = smov %s904_s27 }
 0x211   : > { %p19_p5 = scmp.ge.s32.totalorder %s22_s8, 4   ;;  %s1106_s27 = smov %s908_s28 }
 0x212   : > { %s1107_s28 = smov %s1021_s15  ;;  %s1108_s29 = smov %s916_s30 }
 0x213   : > { %s1109_s30 = smov %s1111_s10  ;;  %21 = sbr.rel (!%p19_p5) target bundleno = 7 (0x7), region = 86 }
 0x21a   :  { %669 = vsyncpa [#allocation4], 1 }
 0x21b   :  { %671 = vsyncpa [#allocation4 + $0x1], 1 }

</bundles_post_ra>
